<compile_context>
chip_gen: v6e
topology: v6e:2x2x1
jax: 0.10.0
libtpu: 0.0.40
codegen_flags: <defaults>
</compile_context>

<pallas_src>
import functools

import jax
import jax.numpy as jnp
from jax.experimental import pallas as pl
from jax.experimental.pallas import tpu as pltpu

IN_FEATURES = 6 * 6 * 64   # 2304
OUT_FEATURES = 10
MAX_BATCH_TILE = 1024      # ~85% of HBM roofline; fits default scoped VMEM on all gens


def _fc_logsoftmax_kernel(x_ref, w_ref, b_ref, o_ref):
    # x_ref: [TB, F]   w_ref: [F, 10]   b_ref: [1, 10]   o_ref: [TB, 10]
    logits = jnp.dot(
        x_ref[...], w_ref[...], preferred_element_type=jnp.float32
    ) + b_ref[...]
    # numerically stable log_softmax over the last axis (dim=1); strictly
    # row-wise, so padded rows of a ragged final batch tile are harmless
    # (Pallas clips the writeback).
    m = jnp.max(logits, axis=-1, keepdims=True)
    shifted = logits - m
    lse = jnp.log(jnp.sum(jnp.exp(shifted), axis=-1, keepdims=True))
    o_ref[...] = (shifted - lse).astype(o_ref.dtype)


def _pick_batch_tile(batch: int, batch_tile: int) -> int:
    tb = min(batch_tile, batch)
    # Block second-to-last dim must be a multiple of 8 unless it equals the
    # full array dim.
    if tb != batch and tb % 8 != 0:
        tb = max(8, (tb // 8) * 8)
    return tb


@functools.partial(jax.jit, static_argnames=("batch_tile",))
def auxiliary_model_cifar(x, w, b, *, batch_tile=MAX_BATCH_TILE):
    """x: [B, 2304], w: [2304, 10], b: [10] -> [B, 10] log-probs."""
    B = x.shape[0]
    tb = _pick_batch_tile(B, batch_tile)
    b2d = b.reshape(1, OUT_FEATURES)

    cost = pl.CostEstimate(
        flops=2 * B * IN_FEATURES * OUT_FEATURES,
        transcendentals=2 * B * OUT_FEATURES,
        bytes_accessed=4 * (B * IN_FEATURES
                            + IN_FEATURES * OUT_FEATURES
                            + OUT_FEATURES
                            + B * OUT_FEATURES),
    )

    return pl.pallas_call(
        _fc_logsoftmax_kernel,
        out_shape=jax.ShapeDtypeStruct((B, OUT_FEATURES), x.dtype),
        grid=(pl.cdiv(B, tb),),
        in_specs=[
            # streamed per batch tile (double-buffered by the pipeline)
            pl.BlockSpec((tb, IN_FEATURES), lambda i: (i, 0)),
            # weight & bias: constant block index -> VMEM-resident across steps
            pl.BlockSpec((IN_FEATURES, OUT_FEATURES), lambda i: (0, 0)),
            pl.BlockSpec((1, OUT_FEATURES), lambda i: (0, 0)),
        ],
        out_specs=pl.BlockSpec((tb, OUT_FEATURES), lambda i: (i, 0)),
        compiler_params=pltpu.CompilerParams(
            dimension_semantics=("parallel",),  # megacore split on v7x
        ),
        cost_estimate=cost,
    )(x, w, b2d)


def _init_params(key):
    # nn.Linear default init: U(-1/sqrt(fan_in), +1/sqrt(fan_in))
    kw, kb = jax.random.split(key)
    bound = 1.0 / jnp.sqrt(jnp.float32(IN_FEATURES))
    w = jax.random.uniform(
        kw, (IN_FEATURES, OUT_FEATURES), jnp.float32, -bound, bound
    )
    b = jax.random.uniform(kb, (OUT_FEATURES,), jnp.float32, -bound, bound)
    return w, b


if __name__ == "__main__":
    key = jax.random.PRNGKey(0)
    kx, kp = jax.random.split(key)

    B = 8  # small batch for the smoke test
    x = jax.random.normal(kx, (B, IN_FEATURES), jnp.float32)
    w, b = _init_params(kp)

    out = auxiliary_model_cifar(x, w, b)
    out = jax.block_until_ready(out)

    # sanity check against pure-JAX reference
    ref = jax.nn.log_softmax(x @ w + b, axis=1)
    assert out.shape == (B, OUT_FEATURES)
    assert jnp.allclose(out, ref, atol=1e-5, rtol=1e-5)

    # also exercise a multi-tile, ragged grid to validate the batch tiling path
    B2 = 20
    x2 = jax.random.normal(jax.random.PRNGKey(1), (B2, IN_FEATURES), jnp.float32)
    out2 = jax.block_until_ready(
        auxiliary_model_cifar(x2, w, b, batch_tile=16)
    )
    ref2 = jax.nn.log_softmax(x2 @ w + b, axis=1)
    assert jnp.allclose(out2, ref2, atol=1e-5, rtol=1e-5)

    print("KERNEL_OK")
</pallas_src>

<mosaic_0001>
module attributes {stable_mosaic.version = 11 : i64} {
  func.func @_fc_logsoftmax_kernel(%arg0: i32, %arg1: memref<8x2304xf32, #tpu.memory_space<vmem>>, %arg2: memref<2304x10xf32, #tpu.memory_space<vmem>>, %arg3: memref<1x10xf32, #tpu.memory_space<vmem>>, %arg4: memref<8x10xf32, #tpu.memory_space<vmem>>) attributes {dimension_semantics = [#tpu.dimension_semantics<parallel>], iteration_bounds = array<i64: 1>, scalar_prefetch = 0 : i64, scratch_operands = 0 : i64, tpu.core_type = #tpu.core_type<tc>, window_params = [{transform_indices = @transform_0, window_bounds = array<i64: 8, 2304>}, {pipeline_mode = #tpu.pipeline_mode<synchronous>, transform_indices = @transform_1, window_bounds = array<i64: 2304, 10>}, {pipeline_mode = #tpu.pipeline_mode<synchronous>, transform_indices = @transform_2, window_bounds = array<i64: 1, 10>}, {transform_indices = @transform_3, window_bounds = array<i64: 8, 10>}]} {
    %c0 = arith.constant 0 : index
    %c0_0 = arith.constant 0 : index
    %0 = vector.load %arg1[%c0, %c0_0] : memref<8x2304xf32, #tpu.memory_space<vmem>>, vector<8x2304xf32>
    %c0_1 = arith.constant 0 : index
    %c0_2 = arith.constant 0 : index
    %1 = vector.load %arg2[%c0_1, %c0_2] : memref<2304x10xf32, #tpu.memory_space<vmem>>, vector<2304x10xf32>
    %cst = arith.constant dense<0.000000e+00> : vector<8x10xf32>
    %2 = tpu.matmul %0, %1, %cst {dimension_numbers = #tpu.dot_dimension_numbers<[1], [0], [0], [1], [0, 0, 1, 1], [], []>} : vector<8x2304xf32>, vector<2304x10xf32>, vector<8x10xf32> -> vector<8x10xf32>
    %c0_3 = arith.constant 0 : index
    %c0_4 = arith.constant 0 : index
    %3 = vector.load %arg3[%c0_3, %c0_4] : memref<1x10xf32, #tpu.memory_space<vmem>>, vector<1x10xf32>
    %4 = vector.broadcast %3 : vector<1x10xf32> to vector<8x10xf32>
    %5 = arith.addf %2, %4 : vector<8x10xf32>
    %cst_5 = arith.constant dense<0xFF800000> : vector<8xf32>
    %6 = vector.multi_reduction <maximumf>, %5, %cst_5 [1] : vector<8x10xf32> to vector<8xf32>
    %7 = vector.shape_cast %6 : vector<8xf32> to vector<8x1xf32>
    %8 = vector.broadcast %7 : vector<8x1xf32> to vector<8x10xf32>
    %9 = arith.subf %5, %8 : vector<8x10xf32>
    %10 = math.exp %9 : vector<8x10xf32>
    %cst_6 = arith.constant dense<0.000000e+00> : vector<8xf32>
    %11 = vector.multi_reduction <add>, %10, %cst_6 [1] : vector<8x10xf32> to vector<8xf32>
    %12 = vector.shape_cast %11 : vector<8xf32> to vector<8x1xf32>
    %13 = math.log %12 : vector<8x1xf32>
    %14 = vector.broadcast %13 : vector<8x1xf32> to vector<8x10xf32>
    %15 = arith.subf %9, %14 : vector<8x10xf32>
    %c0_7 = arith.constant 0 : index
    %c0_8 = arith.constant 0 : index
    %16 = vector.load %arg4[%c0_7, %c0_8] : memref<8x10xf32, #tpu.memory_space<vmem>>, vector<8x10xf32>
    tpu.vector_store %arg4[%c0_7, %c0_8], %15 {strides = array<i32>} : memref<8x10xf32, #tpu.memory_space<vmem>>, vector<8x10xf32>,
    return
  }
  func.func @transform_0(%arg0: i32) -> (i32, i32) {
    %c0_i32 = arith.constant 0 : i32
    %c0_i32_0 = arith.constant 0 : i32
    return %arg0, %c0_i32 : i32, i32
  }
  func.func @transform_1(%arg0: i32) -> (i32, i32) {
    %c0_i32 = arith.constant 0 : i32
    %c0_i32_0 = arith.constant 0 : i32
    %c0_i32_1 = arith.constant 0 : i32
    return %c0_i32, %c0_i32_0 : i32, i32
  }
  func.func @transform_2(%arg0: i32) -> (i32, i32) {
    %c0_i32 = arith.constant 0 : i32
    %c0_i32_0 = arith.constant 0 : i32
    %c0_i32_1 = arith.constant 0 : i32
    return %c0_i32, %c0_i32_0 : i32, i32
  }
  func.func @transform_3(%arg0: i32) -> (i32, i32) {
    %c0_i32 = arith.constant 0 : i32
    %c0_i32_0 = arith.constant 0 : i32
    return %arg0, %c0_i32 : i32, i32
  }
}

</mosaic_0001>

<bundles_post_ra>
// kernel: auxiliary_model_cifar.1
= control target key start
LH: loop header
LB: loop body
LE: loop exit
PB: predicated region body
PF: predicated region fallthrough
CT: control target
= control target key end

     0   :  { %s2277_s0 = inlined_call_operand.vmem [shape: f32[8,2304], index: 0, kind: input, shape index: {}]   ;;  %s2278_s1 = inlined_call_operand.vmem [shape: f32[2304,10], index: 1, kind: input, shape index: {}]   ;;  %s2279_s2 = inlined_call_operand.vmem [shape: f32[1,10], index: 2, kind: input, shape index: {}]   ;;  %s2280_s3 = inlined_call_operand.hbm [shape: f32[8,10], index: 3, kind: output, shape index: {}]  }
   0x1   :  { %v64_v0 = vld [vmem:[%s2278_s1 + $0xf8] sm:$0xff]  ;;  %v63_v2 = vld [vmem:[%s2278_s1 + $0xf0] sm:$0xff]  ;;  %v62_v6 = vld [vmem:[%s2278_s1 + $0xe8] sm:$0xff] }
   0x2   :  { %v48_v1 = vld [vmem:[%s2278_s1 + $0x78] sm:$0xff]  ;;  %987 = vmatprep.subr.mxu0 %v64_v0  ;;  %v47_v4 = vld [vmem:[%s2278_s1 + $0x70] sm:$0xff]  ;;  %v46_v8 = vld [vmem:[%s2278_s1 + $0x68] sm:$0xff] }
   0x3   :  { %v96_v3 = vld [vmem:[%s2278_s1 + $0x1f8] sm:$0xff]  ;;  %988 = vmatpush3.msra.mxu0 %v48_v1  ;;  %v95_v7 = vld [vmem:[%s2278_s1 + $0x1f0] sm:$0xff]  ;;  %v94_v10 = vld [vmem:[%s2278_s1 + $0x1e8] sm:$0xff] }
   0x4   :  { %v80_v5 = vld [vmem:[%s2278_s1 + $0x178] sm:$0xff]  ;;  %1022 = vmatprep.subr.mxu1 %v96_v3  ;;  %989 = vmatprep.subr.mxu0 %v63_v2  ;;  %v79_v9 = vld [vmem:[%s2278_s1 + $0x170] sm:$0xff]  ;;  %v61_v11 = vld [vmem:[%s2278_s1 + $0xe0] sm:$0xff] }
   0x5   :  { %1023 = vmatpush3.msra.mxu1 %v80_v5  ;;  %990 = vmatpush3.msra.mxu0 %v47_v4  ;;  %v78_v12 = vld [vmem:[%s2278_s1 + $0x168] sm:$0xff]  ;;  %v45_v13 = vld [vmem:[%s2278_s1 + $0x60] sm:$0xff]  ;;  %v60_v15 = vld [vmem:[%s2278_s1 + $0xd8] sm:$0xff] }
   0x6   :  { %1024 = vmatprep.subr.mxu1 %v95_v7  ;;  %991 = vmatprep.subr.mxu0 %v62_v6  ;;  %v93_v14 = vld [vmem:[%s2278_s1 + $0x1e0] sm:$0xff]  ;;  %v44_v17 = vld [vmem:[%s2278_s1 + $0x58] sm:$0xff]  ;;  %v59_v19 = vld [vmem:[%s2278_s1 + $0xd0] sm:$0xff] }
   0x7   :  { %1025 = vmatpush3.msra.mxu1 %v79_v9  ;;  %992 = vmatpush3.msra.mxu0 %v46_v8  ;;  %v77_v16 = vld [vmem:[%s2278_s1 + $0x160] sm:$0xff]  ;;  %v92_v18 = vld [vmem:[%s2278_s1 + $0x1d8] sm:$0xff]  ;;  %v43_v21 = vld [vmem:[%s2278_s1 + $0x50] sm:$0xff] }
   0x8   :  { %1026 = vmatprep.subr.mxu1 %v94_v10  ;;  %993 = vmatprep.subr.mxu0 %v61_v11  ;;  %v76_v20 = vld [vmem:[%s2278_s1 + $0x158] sm:$0xff]  ;;  %v91_v22 = vld [vmem:[%s2278_s1 + $0x1d0] sm:$0xff]  ;;  %v58_v23 = vld [vmem:[%s2278_s1 + $0xc8] sm:$0xff] }
   0x9   :  { %1027 = vmatpush3.msra.mxu1 %v78_v12  ;;  %994 = vmatpush3.msra.mxu0 %v45_v13  ;;  %v75_v24 = vld [vmem:[%s2278_s1 + $0x150] sm:$0xff]  ;;  %v42_v25 = vld [vmem:[%s2278_s1 + $0x48] sm:$0xff]  ;;  %v57_v27 = vld [vmem:[%s2278_s1 + $0xc0] sm:$0xff] }
   0xa   :  { %1028 = vmatprep.subr.mxu1 %v93_v14  ;;  %995 = vmatprep.subr.mxu0 %v60_v15  ;;  %v90_v26 = vld [vmem:[%s2278_s1 + $0x1c8] sm:$0xff]  ;;  %v41_v29 = vld [vmem:[%s2278_s1 + $0x40] sm:$0xff]  ;;  %v56_v31 = vld [vmem:[%s2278_s1 + $0xb8] sm:$0xff] }
   0xb   :  { %1029 = vmatpush3.msra.mxu1 %v77_v16  ;;  %996 = vmatpush3.msra.mxu0 %v44_v17  ;;  %v74_v28 = vld [vmem:[%s2278_s1 + $0x148] sm:$0xff]  ;;  %v89_v30 = vld [vmem:[%s2278_s1 + $0x1c0] sm:$0xff]  ;;  %v40_v33 = vld [vmem:[%s2278_s1 + $0x38] sm:$0xff] }
   0xc   :  { %1030 = vmatprep.subr.mxu1 %v92_v18  ;;  %997 = vmatprep.subr.mxu0 %v59_v19  ;;  %v73_v32 = vld [vmem:[%s2278_s1 + $0x140] sm:$0xff]  ;;  %v88_v34 = vld [vmem:[%s2278_s1 + $0x1b8] sm:$0xff]  ;;  %v55_v35 = vld [vmem:[%s2278_s1 + $0xb0] sm:$0xff] }
   0xd   :  { %1031 = vmatpush3.msra.mxu1 %v76_v20  ;;  %998 = vmatpush3.msra.mxu0 %v43_v21  ;;  %v72_v36 = vld [vmem:[%s2278_s1 + $0x138] sm:$0xff]  ;;  %v39_v37 = vld [vmem:[%s2278_s1 + $0x30] sm:$0xff]  ;;  %v54_v39 = vld [vmem:[%s2278_s1 + $0xa8] sm:$0xff] }
   0xe   :  { %1032 = vmatprep.subr.mxu1 %v91_v22  ;;  %999 = vmatprep.subr.mxu0 %v58_v23  ;;  %v87_v38 = vld [vmem:[%s2278_s1 + $0x1b0] sm:$0xff]  ;;  %v38_v41 = vld [vmem:[%s2278_s1 + $0x28] sm:$0xff]  ;;  %v53_v43 = vld [vmem:[%s2278_s1 + $0xa0] sm:$0xff] }
   0xf   :  { %1033 = vmatpush3.msra.mxu1 %v75_v24  ;;  %1000 = vmatpush3.msra.mxu0 %v42_v25  ;;  %v71_v40 = vld [vmem:[%s2278_s1 + $0x130] sm:$0xff]  ;;  %v86_v42 = vld [vmem:[%s2278_s1 + $0x1a8] sm:$0xff]  ;;  %v37_v45 = vld [vmem:[%s2278_s1 + $0x20] sm:$0xff] }
  0x10   :  { %1034 = vmatprep.subr.mxu1 %v90_v26  ;;  %1001 = vmatprep.subr.mxu0 %v57_v27  ;;  %v70_v44 = vld [vmem:[%s2278_s1 + $0x128] sm:$0xff]  ;;  %v85_v46 = vld [vmem:[%s2278_s1 + $0x1a0] sm:$0xff]  ;;  %v52_v47 = vld [vmem:[%s2278_s1 + $0x98] sm:$0xff] }
  0x11   :  { %1035 = vmatpush3.msra.mxu1 %v74_v28  ;;  %1002 = vmatpush3.msra.mxu0 %v41_v29  ;;  %v69_v48 = vld [vmem:[%s2278_s1 + $0x120] sm:$0xff]  ;;  %v36_v49 = vld [vmem:[%s2278_s1 + $0x18] sm:$0xff]  ;;  %v51_v51 = vld [vmem:[%s2278_s1 + $0x90] sm:$0xff] }
  0x12   :  { %1036 = vmatprep.subr.mxu1 %v89_v30  ;;  %1003 = vmatprep.subr.mxu0 %v56_v31  ;;  %v84_v50 = vld [vmem:[%s2278_s1 + $0x198] sm:$0xff]  ;;  %v35_v53 = vld [vmem:[%s2278_s1 + $0x10] sm:$0xff]  ;;  %v50_v55 = vld [vmem:[%s2278_s1 + $0x88] sm:$0xff] }
  0x13   :  { %1037 = vmatpush3.msra.mxu1 %v73_v32  ;;  %1004 = vmatpush3.msra.mxu0 %v40_v33  ;;  %v68_v52 = vld [vmem:[%s2278_s1 + $0x118] sm:$0xff]  ;;  %v83_v54 = vld [vmem:[%s2278_s1 + $0x190] sm:$0xff]  ;;  %v34_v57 = vld [vmem:[%s2278_s1 + $0x8] sm:$0xff] }
  0x14   :  { %1038 = vmatprep.subr.mxu1 %v88_v34  ;;  %1005 = vmatprep.subr.mxu0 %v55_v35  ;;  %v67_v56 = vld [vmem:[%s2278_s1 + $0x110] sm:$0xff]  ;;  %v82_v58 = vld [vmem:[%s2278_s1 + $0x188] sm:$0xff]  ;;  %v49_v59 = vld [vmem:[%s2278_s1 + $0x80] sm:$0xff] }
  0x15   :  { %1039 = vmatpush3.msra.mxu1 %v72_v36  ;;  %1006 = vmatpush3.msra.mxu0 %v39_v37  ;;  %v16_v60 = vld [vmem:[%s2277_s0 + $0x8] sm:$0xff]  ;;  %v33_v61 = vld [vmem:[%s2278_s1] sm:$0xff]  ;;  %v128_v1 = vld [vmem:[%s2278_s1 + $0x2f8] sm:$0xff] }
  0x16   :  { %1040 = vmatprep.subr.mxu1 %v87_v38  ;;  %1007 = vmatprep.subr.mxu0 %v54_v39  ;;  %v66_v62 = vld [vmem:[%s2278_s1 + $0x108] sm:$0xff]  ;;  %v15_v63 = vld [vmem:[%s2277_s0] sm:$0xff]  ;;  %v18_v3 = vld [vmem:[%s2277_s0 + $0x18] sm:$0xff] }
  0x17   :  { %1041 = vmatpush3.msra.mxu1 %v71_v40  ;;  %1008 = vmatpush3.msra.mxu0 %v38_v41  ;;  %v81_v0 = vld [vmem:[%s2278_s1 + $0x180] sm:$0xff]  ;;  %v112_v4 = vld [vmem:[%s2278_s1 + $0x278] sm:$0xff]  ;;  %v17_v5 = vld [vmem:[%s2277_s0 + $0x10] sm:$0xff] }
  0x18   :  { %1042 = vmatprep.subr.mxu1 %v86_v42  ;;  %1009 = vmatprep.subr.mxu0 %v53_v43  ;;  %v65_v2 = vld [vmem:[%s2278_s1 + $0x100] sm:$0xff]  ;;  %v127_v6 = vld [vmem:[%s2278_s1 + $0x2f0] sm:$0xff]  ;;  %v160_v7 = vld [vmem:[%s2278_s1 + $0x3f8] sm:$0xff] }
  0x19   :  { %1043 = vmatpush3.msra.mxu1 %v70_v44  ;;  %1010 = vmatpush3.msra.mxu0 %v37_v45  ;;  %v111_v8 = vld [vmem:[%s2278_s1 + $0x270] sm:$0xff]  ;;  %v144_v9 = vld [vmem:[%s2278_s1 + $0x378] sm:$0xff]  ;;  %v126_v10 = vld [vmem:[%s2278_s1 + $0x2e8] sm:$0xff] }
  0x1a   :  { %1044 = vmatprep.subr.mxu1 %v85_v46  ;;  %1011 = vmatprep.subr.mxu0 %v52_v47  ;;  %v159_v11 = vld [vmem:[%s2278_s1 + $0x3f0] sm:$0xff]  ;;  %v110_v12 = vld [vmem:[%s2278_s1 + $0x268] sm:$0xff]  ;;  %v125_v14 = vld [vmem:[%s2278_s1 + $0x2e0] sm:$0xff] }
  0x1b   :  { %1045 = vmatpush3.msra.mxu1 %v69_v48  ;;  %1012 = vmatpush3.msra.mxu0 %v36_v49  ;;  %v143_v13 = vld [vmem:[%s2278_s1 + $0x370] sm:$0xff]  ;;  %v158_v15 = vld [vmem:[%s2278_s1 + $0x3e8] sm:$0xff]  ;;  %v109_v16 = vld [vmem:[%s2278_s1 + $0x260] sm:$0xff] }
  0x1c   :  { %1046 = vmatprep.subr.mxu1 %v84_v50  ;;  %1013 = vmatprep.subr.mxu0 %v51_v51  ;;  %v142_v17 = vld [vmem:[%s2278_s1 + $0x368] sm:$0xff]  ;;  %v124_v18 = vld [vmem:[%s2278_s1 + $0x2d8] sm:$0xff]  ;;  %v157_v19 = vld [vmem:[%s2278_s1 + $0x3e0] sm:$0xff] }
  0x1d   :  { %1047 = vmatpush3.msra.mxu1 %v68_v52  ;;  %1014 = vmatpush3.msra.mxu0 %v35_v53  ;;  %v108_v20 = vld [vmem:[%s2278_s1 + $0x258] sm:$0xff]  ;;  %v141_v21 = vld [vmem:[%s2278_s1 + $0x360] sm:$0xff]  ;;  %v123_v22 = vld [vmem:[%s2278_s1 + $0x2d0] sm:$0xff] }
  0x1e   :  { %1048 = vmatprep.subr.mxu1 %v83_v54  ;;  %1015 = vmatprep.subr.mxu0 %v50_v55  ;;  %v156_v23 = vld [vmem:[%s2278_s1 + $0x3d8] sm:$0xff]  ;;  %v107_v24 = vld [vmem:[%s2278_s1 + $0x250] sm:$0xff]  ;;  %v122_v26 = vld [vmem:[%s2278_s1 + $0x2c8] sm:$0xff] }
  0x1f   :  { %1049 = vmatpush3.msra.mxu1 %v67_v56  ;;  %1016 = vmatpush3.msra.mxu0 %v34_v57  ;;  %v140_v25 = vld [vmem:[%s2278_s1 + $0x358] sm:$0xff]  ;;  %v155_v27 = vld [vmem:[%s2278_s1 + $0x3d0] sm:$0xff]  ;;  %v106_v28 = vld [vmem:[%s2278_s1 + $0x248] sm:$0xff] }
  0x20   :  { %1050 = vmatprep.subr.mxu1 %v82_v58  ;;  %1017 = vmatprep.subr.mxu0 %v49_v59  ;;  %v139_v29 = vld [vmem:[%s2278_s1 + $0x350] sm:$0xff]  ;;  %v121_v30 = vld [vmem:[%s2278_s1 + $0x2c0] sm:$0xff]  ;;  %v154_v31 = vld [vmem:[%s2278_s1 + $0x3c8] sm:$0xff] }
  0x21   :  { %392 = vmatprep.mubr.f32.mxu0 %v16_v60  ;;  %1018 = vmatpush3.msra.mxu0 %v33_v61  ;;  %v105_v32 = vld [vmem:[%s2278_s1 + $0x240] sm:$0xff]  ;;  %v138_v33 = vld [vmem:[%s2278_s1 + $0x348] sm:$0xff]  ;;  %v120_v34 = vld [vmem:[%s2278_s1 + $0x2b8] sm:$0xff] }
  0x22   :  { %1051 = vmatpush3.msra.mxu1 %v66_v62  ;;  %393 = vmatmul.mubr.f32.vlgmr.msra.gmra.mxu0 %v15_v63  ;;  %v153_v35 = vld [vmem:[%s2278_s1 + $0x3c0] sm:$0xff]  ;;  %v104_v36 = vld [vmem:[%s2278_s1 + $0x238] sm:$0xff]  ;;  %v119_v38 = vld [vmem:[%s2278_s1 + $0x2b0] sm:$0xff] }
  0x23   :  { %1052 = vmatprep.subr.mxu1 %v81_v0  ;;  %1057 = vmatprep.subr.mxu0 %v128_v1  ;;  %v137_v37 = vld [vmem:[%s2278_s1 + $0x340] sm:$0xff]  ;;  %v152_v39 = vld [vmem:[%s2278_s1 + $0x3b8] sm:$0xff]  ;;  %v103_v40 = vld [vmem:[%s2278_s1 + $0x230] sm:$0xff] }
  0x24   :  { %1053 = vmatpush3.msra.mxu1 %v65_v2  ;;  %462 = vmatprep.mubr.f32.mxu1 %v18_v3  ;;  %v136_v41 = vld [vmem:[%s2278_s1 + $0x338] sm:$0xff]  ;;  %v118_v42 = vld [vmem:[%s2278_s1 + $0x2a8] sm:$0xff]  ;;  %v151_v43 = vld [vmem:[%s2278_s1 + $0x3b0] sm:$0xff] }
  0x25   :  { %1058 = vmatpush3.msra.mxu0 %v112_v4  ;;  %463 = vmatmul.mubr.f32.vlgmr.msra.gmra.mxu1 %v17_v5  ;;  %v102_v44 = vld [vmem:[%s2278_s1 + $0x228] sm:$0xff]  ;;  %v135_v45 = vld [vmem:[%s2278_s1 + $0x330] sm:$0xff]  ;;  %v117_v46 = vld [vmem:[%s2278_s1 + $0x2a0] sm:$0xff] }
  0x26   :  { %1059 = vmatprep.subr.mxu0 %v127_v6  ;;  %1092 = vmatprep.subr.mxu1 %v160_v7  ;;  %v150_v47 = vld [vmem:[%s2278_s1 + $0x3a8] sm:$0xff]  ;;  %v101_v48 = vld [vmem:[%s2278_s1 + $0x220] sm:$0xff]  ;;  %v116_v50 = vld [vmem:[%s2278_s1 + $0x298] sm:$0xff] }
  0x27   :  { %1060 = vmatpush3.msra.mxu0 %v111_v8  ;;  %1093 = vmatpush3.msra.mxu1 %v144_v9  ;;  %v134_v49 = vld [vmem:[%s2278_s1 + $0x328] sm:$0xff]  ;;  %v149_v51 = vld [vmem:[%s2278_s1 + $0x3a0] sm:$0xff]  ;;  %v100_v52 = vld [vmem:[%s2278_s1 + $0x218] sm:$0xff] }
  0x28   :  { %1061 = vmatprep.subr.mxu0 %v126_v10  ;;  %1094 = vmatprep.subr.mxu1 %v159_v11  ;;  %v133_v53 = vld [vmem:[%s2278_s1 + $0x320] sm:$0xff]  ;;  %v115_v54 = vld [vmem:[%s2278_s1 + $0x290] sm:$0xff]  ;;  %v148_v55 = vld [vmem:[%s2278_s1 + $0x398] sm:$0xff] }
  0x29   :  { %1062 = vmatpush3.msra.mxu0 %v110_v12  ;;  %1095 = vmatpush3.msra.mxu1 %v143_v13  ;;  %v99_v56 = vld [vmem:[%s2278_s1 + $0x210] sm:$0xff]  ;;  %v132_v57 = vld [vmem:[%s2278_s1 + $0x318] sm:$0xff]  ;;  %v114_v58 = vld [vmem:[%s2278_s1 + $0x288] sm:$0xff] }
  0x2a   :  { %1063 = vmatprep.subr.mxu0 %v125_v14  ;;  %1096 = vmatprep.subr.mxu1 %v158_v15  ;;  %v147_v59 = vld [vmem:[%s2278_s1 + $0x390] sm:$0xff]  ;;  %v98_v60 = vld [vmem:[%s2278_s1 + $0x208] sm:$0xff]  ;;  %v113_v62 = vld [vmem:[%s2278_s1 + $0x280] sm:$0xff] }
  0x2b   :  { %1064 = vmatpush3.msra.mxu0 %v109_v16  ;;  %1097 = vmatpush3.msra.mxu1 %v142_v17  ;;  %v131_v61 = vld [vmem:[%s2278_s1 + $0x310] sm:$0xff]  ;;  %v146_v63 = vld [vmem:[%s2278_s1 + $0x388] sm:$0xff]  ;;  %v97_v0 = vld [vmem:[%s2278_s1 + $0x200] sm:$0xff] }
  0x2c   :  { %1065 = vmatprep.subr.mxu0 %v124_v18  ;;  %1098 = vmatprep.subr.mxu1 %v157_v19  ;;  %v20_v1 = vld [vmem:[%s2277_s0 + $0x28] sm:$0xff]  ;;  %v19_v3 = vld [vmem:[%s2277_s0 + $0x20] sm:$0xff]  ;;  %v192_v5 = vld [vmem:[%s2278_s1 + $0x4f8] sm:$0xff] }
  0x2d   :  { %1066 = vmatpush3.msra.mxu0 %v108_v20  ;;  %1099 = vmatpush3.msra.mxu1 %v141_v21  ;;  %v130_v2 = vld [vmem:[%s2278_s1 + $0x308] sm:$0xff]  ;;  %v145_v4 = vld [vmem:[%s2278_s1 + $0x380] sm:$0xff]  ;;  %v22_v7 = vld [vmem:[%s2277_s0 + $0x38] sm:$0xff] }
  0x2e   :  { %1067 = vmatprep.subr.mxu0 %v123_v22  ;;  %1100 = vmatprep.subr.mxu1 %v156_v23  ;;  %v129_v6 = vld [vmem:[%s2278_s1 + $0x300] sm:$0xff]  ;;  %v176_v8 = vld [vmem:[%s2278_s1 + $0x478] sm:$0xff]  ;;  %v21_v9 = vld [vmem:[%s2277_s0 + $0x30] sm:$0xff] }
  0x2f   :  { %1068 = vmatpush3.msra.mxu0 %v107_v24  ;;  %1101 = vmatpush3.msra.mxu1 %v140_v25  ;;  %v191_v10 = vld [vmem:[%s2278_s1 + $0x4f0] sm:$0xff]  ;;  %v224_v11 = vld [vmem:[%s2278_s1 + $0x5f8] sm:$0xff]  ;;  %v190_v14 = vld [vmem:[%s2278_s1 + $0x4e8] sm:$0xff] }
  0x30   :  { %1069 = vmatprep.subr.mxu0 %v122_v26  ;;  %1102 = vmatprep.subr.mxu1 %v155_v27  ;;  %v175_v12 = vld [vmem:[%s2278_s1 + $0x470] sm:$0xff]  ;;  %v208_v13 = vld [vmem:[%s2278_s1 + $0x578] sm:$0xff]  ;;  %v174_v16 = vld [vmem:[%s2278_s1 + $0x468] sm:$0xff] }
  0x31   :  { %1070 = vmatpush3.msra.mxu0 %v106_v28  ;;  %1103 = vmatpush3.msra.mxu1 %v139_v29  ;;  %v223_v15 = vld [vmem:[%s2278_s1 + $0x5f0] sm:$0xff]  ;;  %v189_v18 = vld [vmem:[%s2278_s1 + $0x4e0] sm:$0xff]  ;;  %v222_v19 = vld [vmem:[%s2278_s1 + $0x5e8] sm:$0xff] }
  0x32   :  { %1071 = vmatprep.subr.mxu0 %v121_v30  ;;  %1104 = vmatprep.subr.mxu1 %v154_v31  ;;  %v207_v17 = vld [vmem:[%s2278_s1 + $0x570] sm:$0xff]  ;;  %v173_v20 = vld [vmem:[%s2278_s1 + $0x460] sm:$0xff]  ;;  %v206_v21 = vld [vmem:[%s2278_s1 + $0x568] sm:$0xff] }
  0x33   :  { %1072 = vmatpush3.msra.mxu0 %v105_v32  ;;  %1105 = vmatpush3.msra.mxu1 %v138_v33  ;;  %v188_v22 = vld [vmem:[%s2278_s1 + $0x4d8] sm:$0xff]  ;;  %v221_v23 = vld [vmem:[%s2278_s1 + $0x5e0] sm:$0xff]  ;;  %v187_v26 = vld [vmem:[%s2278_s1 + $0x4d0] sm:$0xff] }
  0x34   :  { %1073 = vmatprep.subr.mxu0 %v120_v34  ;;  %1106 = vmatprep.subr.mxu1 %v153_v35  ;;  %v172_v24 = vld [vmem:[%s2278_s1 + $0x458] sm:$0xff]  ;;  %v205_v25 = vld [vmem:[%s2278_s1 + $0x560] sm:$0xff]  ;;  %v171_v28 = vld [vmem:[%s2278_s1 + $0x450] sm:$0xff] }
  0x35   :  { %1074 = vmatpush3.msra.mxu0 %v104_v36  ;;  %1107 = vmatpush3.msra.mxu1 %v137_v37  ;;  %v220_v27 = vld [vmem:[%s2278_s1 + $0x5d8] sm:$0xff]  ;;  %v186_v30 = vld [vmem:[%s2278_s1 + $0x4c8] sm:$0xff]  ;;  %v219_v31 = vld [vmem:[%s2278_s1 + $0x5d0] sm:$0xff] }
  0x36   :  { %1075 = vmatprep.subr.mxu0 %v119_v38  ;;  %1108 = vmatprep.subr.mxu1 %v152_v39  ;;  %v204_v29 = vld [vmem:[%s2278_s1 + $0x558] sm:$0xff]  ;;  %v170_v32 = vld [vmem:[%s2278_s1 + $0x448] sm:$0xff]  ;;  %v203_v33 = vld [vmem:[%s2278_s1 + $0x550] sm:$0xff] }
  0x37   :  { %1076 = vmatpush3.msra.mxu0 %v103_v40  ;;  %1109 = vmatpush3.msra.mxu1 %v136_v41  ;;  %v185_v34 = vld [vmem:[%s2278_s1 + $0x4c0] sm:$0xff]  ;;  %v218_v35 = vld [vmem:[%s2278_s1 + $0x5c8] sm:$0xff]  ;;  %v184_v38 = vld [vmem:[%s2278_s1 + $0x4b8] sm:$0xff] }
  0x38   :  { %1077 = vmatprep.subr.mxu0 %v118_v42  ;;  %1110 = vmatprep.subr.mxu1 %v151_v43  ;;  %v169_v36 = vld [vmem:[%s2278_s1 + $0x440] sm:$0xff]  ;;  %v202_v37 = vld [vmem:[%s2278_s1 + $0x548] sm:$0xff]  ;;  %v168_v40 = vld [vmem:[%s2278_s1 + $0x438] sm:$0xff] }
  0x39   :  { %1078 = vmatpush3.msra.mxu0 %v102_v44  ;;  %1111 = vmatpush3.msra.mxu1 %v135_v45  ;;  %v217_v39 = vld [vmem:[%s2278_s1 + $0x5c0] sm:$0xff]  ;;  %v183_v42 = vld [vmem:[%s2278_s1 + $0x4b0] sm:$0xff]  ;;  %v216_v43 = vld [vmem:[%s2278_s1 + $0x5b8] sm:$0xff] }
  0x3a   :  { %1079 = vmatprep.subr.mxu0 %v117_v46  ;;  %1112 = vmatprep.subr.mxu1 %v150_v47  ;;  %v201_v41 = vld [vmem:[%s2278_s1 + $0x540] sm:$0xff]  ;;  %v167_v44 = vld [vmem:[%s2278_s1 + $0x430] sm:$0xff]  ;;  %v200_v45 = vld [vmem:[%s2278_s1 + $0x538] sm:$0xff] }
  0x3b   :  { %1080 = vmatpush3.msra.mxu0 %v101_v48  ;;  %1113 = vmatpush3.msra.mxu1 %v134_v49  ;;  %v182_v46 = vld [vmem:[%s2278_s1 + $0x4a8] sm:$0xff]  ;;  %v215_v47 = vld [vmem:[%s2278_s1 + $0x5b0] sm:$0xff] }
  0x3c   :  { %1081 = vmatprep.subr.mxu0 %v116_v50  ;;  %1114 = vmatprep.subr.mxu1 %v149_v51  ;;  %v166_v48 = vld [vmem:[%s2278_s1 + $0x428] sm:$0xff]  ;;  %v199_v49 = vld [vmem:[%s2278_s1 + $0x530] sm:$0xff]  ;;  %v181_v50 = vld [vmem:[%s2278_s1 + $0x4a0] sm:$0xff] }
  0x3d   :  { %1082 = vmatpush3.msra.mxu0 %v100_v52  ;;  %1115 = vmatpush3.msra.mxu1 %v133_v53  ;;  %v214_v51 = vld [vmem:[%s2278_s1 + $0x5a8] sm:$0xff]  ;;  %v165_v52 = vld [vmem:[%s2278_s1 + $0x420] sm:$0xff] }
  0x3e   :  { %1083 = vmatprep.subr.mxu0 %v115_v54  ;;  %1116 = vmatprep.subr.mxu1 %v148_v55  ;;  %v198_v53 = vld [vmem:[%s2278_s1 + $0x528] sm:$0xff]  ;;  %v180_v54 = vld [vmem:[%s2278_s1 + $0x498] sm:$0xff]  ;;  %v213_v55 = vld [vmem:[%s2278_s1 + $0x5a0] sm:$0xff] }
  0x3f   :  { %1084 = vmatpush3.msra.mxu0 %v99_v56  ;;  %1117 = vmatpush3.msra.mxu1 %v132_v57  ;;  %v164_v56 = vld [vmem:[%s2278_s1 + $0x418] sm:$0xff]  ;;  %v197_v57 = vld [vmem:[%s2278_s1 + $0x520] sm:$0xff] }
  0x40   :  { %1085 = vmatprep.subr.mxu0 %v114_v58  ;;  %1118 = vmatprep.subr.mxu1 %v147_v59  ;;  %v179_v58 = vld [vmem:[%s2278_s1 + $0x490] sm:$0xff]  ;;  %v212_v59 = vld [vmem:[%s2278_s1 + $0x598] sm:$0xff] }
  0x41   :  { %1086 = vmatpush3.msra.mxu0 %v98_v60  ;;  %1119 = vmatpush3.msra.mxu1 %v131_v61  ;;  %v163_v60 = vld [vmem:[%s2278_s1 + $0x410] sm:$0xff]  ;;  %v196_v61 = vld [vmem:[%s2278_s1 + $0x518] sm:$0xff] }
  0x42   :  { %1087 = vmatprep.subr.mxu0 %v113_v62  ;;  %1120 = vmatprep.subr.mxu1 %v146_v63  ;;  %v178_v62 = vld [vmem:[%s2278_s1 + $0x488] sm:$0xff]  ;;  %v211_v63 = vld [vmem:[%s2278_s1 + $0x590] sm:$0xff] }
  0x43   :  { %1088 = vmatpush3.msra.mxu0 %v97_v0  ;;  %532 = vmatprep.mubr.f32.mxu0 %v20_v1  ;;  %v162_v0 = vld [vmem:[%s2278_s1 + $0x408] sm:$0xff]  ;;  %v195_v1 = vld [vmem:[%s2278_s1 + $0x510] sm:$0xff] }
  0x44   :  { %1121 = vmatpush3.msra.mxu1 %v130_v2  ;;  %533 = vmatmul.mubr.f32.vlgmr.msra.gmra.mxu0 %v19_v3  ;;  %v177_v2 = vld [vmem:[%s2278_s1 + $0x480] sm:$0xff]  ;;  %v210_v3 = vld [vmem:[%s2278_s1 + $0x588] sm:$0xff] }
  0x45   :  { %1122 = vmatprep.subr.mxu1 %v145_v4  ;;  %1127 = vmatprep.subr.mxu0 %v192_v5  ;;  %v161_v4 = vld [vmem:[%s2278_s1 + $0x400] sm:$0xff]  ;;  %v24_v5 = vld [vmem:[%s2277_s0 + $0x48] sm:$0xff] }
  0x46   :  { %1123 = vmatpush3.msra.mxu1 %v129_v6  ;;  %602 = vmatprep.mubr.f32.mxu1 %v22_v7  ;;  %v194_v6 = vld [vmem:[%s2278_s1 + $0x508] sm:$0xff]  ;;  %v23_v7 = vld [vmem:[%s2277_s0 + $0x40] sm:$0xff] }
  0x47   :  { %1128 = vmatpush3.msra.mxu0 %v176_v8  ;;  %603 = vmatmul.mubr.f32.vlgmr.msra.gmra.mxu1 %v21_v9  ;;  %v209_v8 = vld [vmem:[%s2278_s1 + $0x580] sm:$0xff]  ;;  %v256_v9 = vld [vmem:[%s2278_s1 + $0x6f8] sm:$0xff] }
  0x48   :  { %1129 = vmatprep.subr.mxu0 %v191_v10  ;;  %1162 = vmatprep.subr.mxu1 %v224_v11  ;;  %v193_v10 = vld [vmem:[%s2278_s1 + $0x500] sm:$0xff]  ;;  %v26_v11 = vld [vmem:[%s2277_s0 + $0x58] sm:$0xff] }
  0x49   :  { %1130 = vmatpush3.msra.mxu0 %v175_v12  ;;  %1163 = vmatpush3.msra.mxu1 %v208_v13  ;;  %v240_v12 = vld [vmem:[%s2278_s1 + $0x678] sm:$0xff]  ;;  %v25_v13 = vld [vmem:[%s2277_s0 + $0x50] sm:$0xff] }
  0x4a   :  { %1131 = vmatprep.subr.mxu0 %v190_v14  ;;  %1164 = vmatprep.subr.mxu1 %v223_v15  ;;  %v255_v14 = vld [vmem:[%s2278_s1 + $0x6f0] sm:$0xff]  ;;  %v288_v15 = vld [vmem:[%s2278_s1 + $0x7f8] sm:$0xff] }
  0x4b   :  { %1132 = vmatpush3.msra.mxu0 %v174_v16  ;;  %1165 = vmatpush3.msra.mxu1 %v207_v17  ;;  %v239_v16 = vld [vmem:[%s2278_s1 + $0x670] sm:$0xff] }
  0x4c   :  { %1133 = vmatprep.subr.mxu0 %v189_v18  ;;  %1166 = vmatprep.subr.mxu1 %v222_v19 }
  0x4d   :  { %1134 = vmatpush3.msra.mxu0 %v173_v20  ;;  %1167 = vmatpush3.msra.mxu1 %v206_v21 }
  0x4e   :  { %1135 = vmatprep.subr.mxu0 %v188_v22  ;;  %1168 = vmatprep.subr.mxu1 %v221_v23 }
  0x4f   :  { %1136 = vmatpush3.msra.mxu0 %v172_v24  ;;  %1169 = vmatpush3.msra.mxu1 %v205_v25 }
  0x50   :  { %1137 = vmatprep.subr.mxu0 %v187_v26  ;;  %1170 = vmatprep.subr.mxu1 %v220_v27 }
  0x51   :  { %1138 = vmatpush3.msra.mxu0 %v171_v28  ;;  %1171 = vmatpush3.msra.mxu1 %v204_v29 }
  0x52   :  { %1139 = vmatprep.subr.mxu0 %v186_v30  ;;  %1172 = vmatprep.subr.mxu1 %v219_v31 }
  0x53   :  { %1140 = vmatpush3.msra.mxu0 %v170_v32  ;;  %1173 = vmatpush3.msra.mxu1 %v203_v33 }
  0x54   :  { %1141 = vmatprep.subr.mxu0 %v185_v34  ;;  %1174 = vmatprep.subr.mxu1 %v218_v35 }
  0x55   :  { %1142 = vmatpush3.msra.mxu0 %v169_v36  ;;  %1175 = vmatpush3.msra.mxu1 %v202_v37 }
  0x56   :  { %1143 = vmatprep.subr.mxu0 %v184_v38  ;;  %1176 = vmatprep.subr.mxu1 %v217_v39 }
  0x57   :  { %1144 = vmatpush3.msra.mxu0 %v168_v40  ;;  %1177 = vmatpush3.msra.mxu1 %v201_v41 }
  0x58   :  { %1145 = vmatprep.subr.mxu0 %v183_v42  ;;  %1178 = vmatprep.subr.mxu1 %v216_v43 }
  0x59   :  { %1146 = vmatpush3.msra.mxu0 %v167_v44  ;;  %1179 = vmatpush3.msra.mxu1 %v200_v45 }
  0x5a   :  { %1147 = vmatprep.subr.mxu0 %v182_v46  ;;  %1180 = vmatprep.subr.mxu1 %v215_v47 }
  0x5b   :  { %1148 = vmatpush3.msra.mxu0 %v166_v48  ;;  %1181 = vmatpush3.msra.mxu1 %v199_v49 }
  0x5c   :  { %1149 = vmatprep.subr.mxu0 %v181_v50  ;;  %1182 = vmatprep.subr.mxu1 %v214_v51 }
  0x5d   :  { %1150 = vmatpush3.msra.mxu0 %v165_v52  ;;  %1183 = vmatpush3.msra.mxu1 %v198_v53 }
  0x5e   :  { %1151 = vmatprep.subr.mxu0 %v180_v54  ;;  %1184 = vmatprep.subr.mxu1 %v213_v55 }
  0x5f   :  { %1152 = vmatpush3.msra.mxu0 %v164_v56  ;;  %1185 = vmatpush3.msra.mxu1 %v197_v57 }
  0x60   :  { %1153 = vmatprep.subr.mxu0 %v179_v58  ;;  %1186 = vmatprep.subr.mxu1 %v212_v59 }
  0x61   :  { %1154 = vmatpush3.msra.mxu0 %v163_v60  ;;  %1187 = vmatpush3.msra.mxu1 %v196_v61 }
  0x62   :  { %1155 = vmatprep.subr.mxu0 %v178_v62  ;;  %1188 = vmatprep.subr.mxu1 %v211_v63 }
  0x63   :  { %1156 = vmatpush3.msra.mxu0 %v162_v0  ;;  %1189 = vmatpush3.msra.mxu1 %v195_v1 }
  0x64   :  { %1157 = vmatprep.subr.mxu0 %v177_v2  ;;  %1190 = vmatprep.subr.mxu1 %v210_v3 }
  0x65   :  { %1158 = vmatpush3.msra.mxu0 %v161_v4  ;;  %672 = vmatprep.mubr.f32.mxu0 %v24_v5 }
  0x66   :  { %1191 = vmatpush3.msra.mxu1 %v194_v6  ;;  %673 = vmatmul.mubr.f32.vlgmr.msra.gmra.mxu0 %v23_v7 }
  0x67   :  { %1192 = vmatprep.subr.mxu1 %v209_v8  ;;  %1197 = vmatprep.subr.mxu0 %v256_v9 }
  0x68   :  { %1193 = vmatpush3.msra.mxu1 %v193_v10 }
  0x69   :  { %8 = vsyncpa [#allocation3], 0  ;;  %742 = vmatprep.mubr.f32.mxu1 %v26_v11  ;;  %1198 = vmatpush3.msra.mxu0 %v240_v12  ;;  %v272_v17 = vld [vmem:[%s2278_s1 + $0x778] sm:$0xff]  ;;  %v254_v18 = vld [vmem:[%s2278_s1 + $0x6e8] sm:$0xff]  ;;  %vm958_vm0 = vcmask 80896  }
  0x6a   :  { %743 = vmatmul.mubr.f32.vlgmr.msra.gmra.mxu1 %v25_v13  ;;  %1199 = vmatprep.subr.mxu0 %v255_v14  ;;  %v287_v19 = vld [vmem:[%s2278_s1 + $0x7f0] sm:$0xff]  ;;  %v238_v20 = vld [vmem:[%s2278_s1 + $0x668] sm:$0xff]  ;;  %v253_v22 = vld [vmem:[%s2278_s1 + $0x6e0] sm:$0xff] }
  0x6b   :  { %1232 = vmatprep.subr.mxu1 %v288_v15  ;;  %1200 = vmatpush3.msra.mxu0 %v239_v16  ;;  %v271_v21 = vld [vmem:[%s2278_s1 + $0x770] sm:$0xff]  ;;  %v286_v23 = vld [vmem:[%s2278_s1 + $0x7e8] sm:$0xff]  ;;  %v237_v24 = vld [vmem:[%s2278_s1 + $0x660] sm:$0xff] }
  0x6c   :  { %1233 = vmatpush3.msra.mxu1 %v272_v17  ;;  %1201 = vmatprep.subr.mxu0 %v254_v18  ;;  %v270_v25 = vld [vmem:[%s2278_s1 + $0x768] sm:$0xff]  ;;  %v252_v26 = vld [vmem:[%s2278_s1 + $0x6d8] sm:$0xff]  ;;  %v285_v27 = vld [vmem:[%s2278_s1 + $0x7e0] sm:$0xff] }
  0x6d   :  { %1234 = vmatprep.subr.mxu1 %v287_v19  ;;  %1202 = vmatpush3.msra.mxu0 %v238_v20  ;;  %v236_v28 = vld [vmem:[%s2278_s1 + $0x658] sm:$0xff]  ;;  %v269_v29 = vld [vmem:[%s2278_s1 + $0x760] sm:$0xff]  ;;  %v251_v30 = vld [vmem:[%s2278_s1 + $0x6d0] sm:$0xff] }
  0x6e   :  { %1235 = vmatpush3.msra.mxu1 %v271_v21  ;;  %1203 = vmatprep.subr.mxu0 %v253_v22  ;;  %v284_v31 = vld [vmem:[%s2278_s1 + $0x7d8] sm:$0xff]  ;;  %v235_v32 = vld [vmem:[%s2278_s1 + $0x650] sm:$0xff]  ;;  %v250_v34 = vld [vmem:[%s2278_s1 + $0x6c8] sm:$0xff] }
  0x6f   :  { %1236 = vmatprep.subr.mxu1 %v286_v23  ;;  %1204 = vmatpush3.msra.mxu0 %v237_v24  ;;  %v268_v33 = vld [vmem:[%s2278_s1 + $0x758] sm:$0xff]  ;;  %v283_v35 = vld [vmem:[%s2278_s1 + $0x7d0] sm:$0xff]  ;;  %v234_v36 = vld [vmem:[%s2278_s1 + $0x648] sm:$0xff] }
  0x70   :  { %1237 = vmatpush3.msra.mxu1 %v270_v25  ;;  %1205 = vmatprep.subr.mxu0 %v252_v26  ;;  %v267_v37 = vld [vmem:[%s2278_s1 + $0x750] sm:$0xff]  ;;  %v249_v38 = vld [vmem:[%s2278_s1 + $0x6c0] sm:$0xff]  ;;  %v282_v39 = vld [vmem:[%s2278_s1 + $0x7c8] sm:$0xff] }
  0x71   :  { %1238 = vmatprep.subr.mxu1 %v285_v27  ;;  %1206 = vmatpush3.msra.mxu0 %v236_v28  ;;  %v233_v40 = vld [vmem:[%s2278_s1 + $0x640] sm:$0xff]  ;;  %v266_v41 = vld [vmem:[%s2278_s1 + $0x748] sm:$0xff]  ;;  %v248_v42 = vld [vmem:[%s2278_s1 + $0x6b8] sm:$0xff] }
  0x72   :  { %1239 = vmatpush3.msra.mxu1 %v269_v29  ;;  %1207 = vmatprep.subr.mxu0 %v251_v30  ;;  %v281_v43 = vld [vmem:[%s2278_s1 + $0x7c0] sm:$0xff]  ;;  %v232_v44 = vld [vmem:[%s2278_s1 + $0x638] sm:$0xff]  ;;  %v247_v46 = vld [vmem:[%s2278_s1 + $0x6b0] sm:$0xff] }
  0x73   :  { %1240 = vmatprep.subr.mxu1 %v284_v31  ;;  %1208 = vmatpush3.msra.mxu0 %v235_v32  ;;  %v265_v45 = vld [vmem:[%s2278_s1 + $0x740] sm:$0xff]  ;;  %v280_v47 = vld [vmem:[%s2278_s1 + $0x7b8] sm:$0xff]  ;;  %v231_v48 = vld [vmem:[%s2278_s1 + $0x630] sm:$0xff] }
  0x74   :  { %1241 = vmatpush3.msra.mxu1 %v268_v33  ;;  %1209 = vmatprep.subr.mxu0 %v250_v34  ;;  %v264_v49 = vld [vmem:[%s2278_s1 + $0x738] sm:$0xff]  ;;  %v246_v50 = vld [vmem:[%s2278_s1 + $0x6a8] sm:$0xff]  ;;  %v279_v51 = vld [vmem:[%s2278_s1 + $0x7b0] sm:$0xff] }
  0x75   :  { %1242 = vmatprep.subr.mxu1 %v283_v35  ;;  %1210 = vmatpush3.msra.mxu0 %v234_v36  ;;  %v230_v52 = vld [vmem:[%s2278_s1 + $0x628] sm:$0xff]  ;;  %v263_v53 = vld [vmem:[%s2278_s1 + $0x730] sm:$0xff]  ;;  %v245_v54 = vld [vmem:[%s2278_s1 + $0x6a0] sm:$0xff] }
  0x76   :  { %1243 = vmatpush3.msra.mxu1 %v267_v37  ;;  %1211 = vmatprep.subr.mxu0 %v249_v38  ;;  %v278_v55 = vld [vmem:[%s2278_s1 + $0x7a8] sm:$0xff]  ;;  %v229_v56 = vld [vmem:[%s2278_s1 + $0x620] sm:$0xff]  ;;  %v244_v58 = vld [vmem:[%s2278_s1 + $0x698] sm:$0xff] }
  0x77   :  { %1244 = vmatprep.subr.mxu1 %v282_v39  ;;  %1212 = vmatpush3.msra.mxu0 %v233_v40  ;;  %v262_v57 = vld [vmem:[%s2278_s1 + $0x728] sm:$0xff]  ;;  %v277_v59 = vld [vmem:[%s2278_s1 + $0x7a0] sm:$0xff]  ;;  %v228_v60 = vld [vmem:[%s2278_s1 + $0x618] sm:$0xff] }
  0x78   :  { %1245 = vmatpush3.msra.mxu1 %v266_v41  ;;  %1213 = vmatprep.subr.mxu0 %v248_v42  ;;  %v261_v61 = vld [vmem:[%s2278_s1 + $0x720] sm:$0xff]  ;;  %v243_v62 = vld [vmem:[%s2278_s1 + $0x690] sm:$0xff]  ;;  %v276_v63 = vld [vmem:[%s2278_s1 + $0x798] sm:$0xff] }
  0x79   :  { %1246 = vmatprep.subr.mxu1 %v281_v43  ;;  %1214 = vmatpush3.msra.mxu0 %v232_v44  ;;  %v227_v0 = vld [vmem:[%s2278_s1 + $0x610] sm:$0xff]  ;;  %v260_v1 = vld [vmem:[%s2278_s1 + $0x718] sm:$0xff]  ;;  %v242_v2 = vld [vmem:[%s2278_s1 + $0x688] sm:$0xff] }
  0x7a   :  { %1247 = vmatpush3.msra.mxu1 %v265_v45  ;;  %1215 = vmatprep.subr.mxu0 %v247_v46  ;;  %v275_v3 = vld [vmem:[%s2278_s1 + $0x790] sm:$0xff]  ;;  %v226_v4 = vld [vmem:[%s2278_s1 + $0x608] sm:$0xff]  ;;  %v241_v6 = vld [vmem:[%s2278_s1 + $0x680] sm:$0xff] }
  0x7b   :  { %1248 = vmatprep.subr.mxu1 %v280_v47  ;;  %1216 = vmatpush3.msra.mxu0 %v231_v48  ;;  %v259_v5 = vld [vmem:[%s2278_s1 + $0x710] sm:$0xff]  ;;  %v274_v7 = vld [vmem:[%s2278_s1 + $0x788] sm:$0xff]  ;;  %v225_v8 = vld [vmem:[%s2278_s1 + $0x600] sm:$0xff] }
  0x7c   :  { %1249 = vmatpush3.msra.mxu1 %v264_v49  ;;  %1217 = vmatprep.subr.mxu0 %v246_v50  ;;  %v28_v9 = vld [vmem:[%s2277_s0 + $0x68] sm:$0xff]  ;;  %v27_v11 = vld [vmem:[%s2277_s0 + $0x60] sm:$0xff]  ;;  %v320_v13 = vld [vmem:[%s2278_s1 + $0x8f8] sm:$0xff] }
  0x7d   :  { %1250 = vmatprep.subr.mxu1 %v279_v51  ;;  %1218 = vmatpush3.msra.mxu0 %v230_v52  ;;  %v258_v10 = vld [vmem:[%s2278_s1 + $0x708] sm:$0xff]  ;;  %v273_v12 = vld [vmem:[%s2278_s1 + $0x780] sm:$0xff]  ;;  %v30_v15 = vld [vmem:[%s2277_s0 + $0x78] sm:$0xff] }
  0x7e   :  { %1251 = vmatpush3.msra.mxu1 %v263_v53  ;;  %1219 = vmatprep.subr.mxu0 %v245_v54  ;;  %v257_v14 = vld [vmem:[%s2278_s1 + $0x700] sm:$0xff]  ;;  %v304_v16 = vld [vmem:[%s2278_s1 + $0x878] sm:$0xff]  ;;  %v29_v17 = vld [vmem:[%s2277_s0 + $0x70] sm:$0xff] }
  0x7f   :  { %1252 = vmatprep.subr.mxu1 %v278_v55  ;;  %1220 = vmatpush3.msra.mxu0 %v229_v56  ;;  %v319_v18 = vld [vmem:[%s2278_s1 + $0x8f0] sm:$0xff]  ;;  %v32_v20 = vld [vmem:[%s2277_s0 + $0x88] sm:$0xff]  ;;  %v317_v23 = vld [vmem:[%s2278_s1 + $0x8e0] sm:$0xff] }
  0x80   :  { %1253 = vmatpush3.msra.mxu1 %v262_v57  ;;  %1221 = vmatprep.subr.mxu0 %v244_v58  ;;  %v303_v19 = vld [vmem:[%s2278_s1 + $0x870] sm:$0xff]  ;;  %v318_v21 = vld [vmem:[%s2278_s1 + $0x8e8] sm:$0xff]  ;;  %v301_v24 = vld [vmem:[%s2278_s1 + $0x860] sm:$0xff] }
  0x81   :  { %1254 = vmatprep.subr.mxu1 %v277_v59  ;;  %1222 = vmatpush3.msra.mxu0 %v228_v60  ;;  %v302_v22 = vld [vmem:[%s2278_s1 + $0x868] sm:$0xff]  ;;  %v316_v25 = vld [vmem:[%s2278_s1 + $0x8d8] sm:$0xff]  ;;  %v315_v27 = vld [vmem:[%s2278_s1 + $0x8d0] sm:$0xff] }
  0x82   :  { %1255 = vmatpush3.msra.mxu1 %v261_v61  ;;  %1223 = vmatprep.subr.mxu0 %v243_v62  ;;  %v300_v26 = vld [vmem:[%s2278_s1 + $0x858] sm:$0xff]  ;;  %v299_v28 = vld [vmem:[%s2278_s1 + $0x850] sm:$0xff]  ;;  %v314_v29 = vld [vmem:[%s2278_s1 + $0x8c8] sm:$0xff] }
  0x83   :  { %1256 = vmatprep.subr.mxu1 %v276_v63  ;;  %1224 = vmatpush3.msra.mxu0 %v227_v0  ;;  %v298_v30 = vld [vmem:[%s2278_s1 + $0x848] sm:$0xff]  ;;  %v313_v31 = vld [vmem:[%s2278_s1 + $0x8c0] sm:$0xff]  ;;  %v312_v33 = vld [vmem:[%s2278_s1 + $0x8b8] sm:$0xff] }
  0x84   :  { %1257 = vmatpush3.msra.mxu1 %v260_v1  ;;  %1225 = vmatprep.subr.mxu0 %v242_v2  ;;  %v297_v32 = vld [vmem:[%s2278_s1 + $0x840] sm:$0xff]  ;;  %v296_v34 = vld [vmem:[%s2278_s1 + $0x838] sm:$0xff]  ;;  %v311_v35 = vld [vmem:[%s2278_s1 + $0x8b0] sm:$0xff] }
  0x85   :  { %1258 = vmatprep.subr.mxu1 %v275_v3  ;;  %1226 = vmatpush3.msra.mxu0 %v226_v4  ;;  %v295_v36 = vld [vmem:[%s2278_s1 + $0x830] sm:$0xff]  ;;  %v310_v37 = vld [vmem:[%s2278_s1 + $0x8a8] sm:$0xff]  ;;  %v309_v39 = vld [vmem:[%s2278_s1 + $0x8a0] sm:$0xff] }
  0x86   :  { %1259 = vmatpush3.msra.mxu1 %v259_v5  ;;  %1227 = vmatprep.subr.mxu0 %v241_v6  ;;  %v294_v38 = vld [vmem:[%s2278_s1 + $0x828] sm:$0xff]  ;;  %v293_v40 = vld [vmem:[%s2278_s1 + $0x820] sm:$0xff]  ;;  %v308_v41 = vld [vmem:[%s2278_s1 + $0x898] sm:$0xff] }
  0x87   :  { %1260 = vmatprep.subr.mxu1 %v274_v7  ;;  %1228 = vmatpush3.msra.mxu0 %v225_v8  ;;  %v292_v42 = vld [vmem:[%s2278_s1 + $0x818] sm:$0xff]  ;;  %v307_v43 = vld [vmem:[%s2278_s1 + $0x890] sm:$0xff]  ;;  %v306_v45 = vld [vmem:[%s2278_s1 + $0x888] sm:$0xff] }
  0x88   :  { %812 = vmatprep.mubr.f32.mxu0 %v28_v9  ;;  %1261 = vmatpush3.msra.mxu1 %v258_v10  ;;  %v291_v44 = vld [vmem:[%s2278_s1 + $0x810] sm:$0xff]  ;;  %v290_v46 = vld [vmem:[%s2278_s1 + $0x808] sm:$0xff]  ;;  %v305_v47 = vld [vmem:[%s2278_s1 + $0x880] sm:$0xff] }
  0x89   :  { %813 = vmatmul.mubr.f32.vlgmr.msra.gmra.mxu0 %v27_v11  ;;  %1262 = vmatprep.subr.mxu1 %v273_v12  ;;  %v289_v48 = vld [vmem:[%s2278_s1 + $0x800] sm:$0xff] }
  0x8a   :  { %1267 = vmatprep.subr.mxu0 %v320_v13  ;;  %1263 = vmatpush3.msra.mxu1 %v257_v14  ;;  %v31_v49 = vld [vmem:[%s2277_s0 + $0x80] sm:$0xff]  ;;  %s1329_s0 = smov [#allocation2]  }
  0x8b   :  { %882 = vmatprep.mubr.f32.mxu1 %v30_v15  ;;  %1268 = vmatpush3.msra.mxu0 %v304_v16  ;;  %v986_v55 = vld [vmem:[%s2279_s2] ss:$0 sm:$0xff]  ;;  %s978_s1 = sshll.u32 %s1329_s0, 4  ;;  %s979_s1 = int_to_ptr.vmem [resolvable:$true] %s978_s1 }
  0x8c   :  { %883 = vmatmul.mubr.f32.vlgmr.msra.gmra.mxu1 %v29_v17  ;;  %1269 = vmatprep.subr.mxu0 %v319_v18  ;;  %s1307_s2 = scalar_lea.vmem %s979_s1, 128  ;;  %p1312_p1 = scmp.lt.s32.totalorder %s979_s1, %s979_s1 }
  0x8d   :  { %1270 = vmatpush3.msra.mxu0 %v303_v19  ;;  %952 = vmatprep.mubr.f32.mxu0 %v32_v20  ;;  %p1308_p0 = scmp.ne.s32.totalorder %s979_s1, %s1307_s2  ;;  %p1313_p2 = scmp.lt.s32.totalorder %s1307_s2, %s1307_s2 }
  0x8e   :  { %1271 = vmatprep.subr.mxu0 %v318_v21 }
  0x8f   :  { %1272 = vmatpush3.msra.mxu0 %v302_v22  ;;  %p1314_p3 = por %p1313_p2, %p1312_p1 }
  0x90   :  { %1273 = vmatprep.subr.mxu0 %v317_v23 }
  0x91   :  { %1274 = vmatpush3.msra.mxu0 %v301_v24  ;;  %p1315_p4 = pnand %p1314_p3, %p1308_p0 }
  0x92   :  { %1275 = vmatprep.subr.mxu0 %v316_v25 }
  0x93   :  { %1276 = vmatpush3.msra.mxu0 %v300_v26 }
  0x94   :  { %1277 = vmatprep.subr.mxu0 %v315_v27 }
  0x95   :  { %1278 = vmatpush3.msra.mxu0 %v299_v28 }
  0x96   :  { %1279 = vmatprep.subr.mxu0 %v314_v29 }
  0x97   :  { %1280 = vmatpush3.msra.mxu0 %v298_v30 }
  0x98   :  { %1281 = vmatprep.subr.mxu0 %v313_v31 }
  0x99   :  { %1282 = vmatpush3.msra.mxu0 %v297_v32 }
  0x9a   :  { %1283 = vmatprep.subr.mxu0 %v312_v33 }
  0x9b   :  { %1284 = vmatpush3.msra.mxu0 %v296_v34 }
  0x9c   :  { %1285 = vmatprep.subr.mxu0 %v311_v35 }
  0x9d   :  { %1286 = vmatpush3.msra.mxu0 %v295_v36 }
  0x9e   :  { %1287 = vmatprep.subr.mxu0 %v310_v37 }
  0x9f   :  { %1288 = vmatpush3.msra.mxu0 %v294_v38 }
  0xa0   :  { %1289 = vmatprep.subr.mxu0 %v309_v39 }
  0xa1   :  { %1290 = vmatpush3.msra.mxu0 %v293_v40 }
  0xa2   :  { %1291 = vmatprep.subr.mxu0 %v308_v41 }
  0xa3   :  { %1292 = vmatpush3.msra.mxu0 %v292_v42 }
  0xa4   :  { %1293 = vmatprep.subr.mxu0 %v307_v43 }
  0xa5   :  { %1294 = vmatpush3.msra.mxu0 %v291_v44 }
  0xa6   :  { %1295 = vmatprep.subr.mxu0 %v306_v45 }
  0xa7   :  { %1296 = vmatpush3.msra.mxu0 %v290_v46 }
  0xa8   :  { %1297 = vmatprep.subr.mxu0 %v305_v47 }
  0xa9   :  { %1298 = vmatpush3.msra.mxu0 %v289_v48 }
  0xaa   :  { %953 = vmatmul.mubr.f32.vlgmr.msra.gmra.mxu0 %v31_v49 }
  0xe2   :  { %v1019_v50 = vpop.f32.mrf.mxu0 }
  0xe4   :  { %v1020_v51 = vpop.f32.mrf.mxu0 }
  0xe5   :  { %v1054_v52 = vpop.f32.mrf.mxu1  ;;  %v1021_v54 = vadd.f32 %v1020_v51, %v1019_v50 }
  0xe7   :  { %v1055_v56 = vpop.f32.mrf.mxu1  ;;  %v395_v59 = vadd.f32 %v1021_v54, %v986_v55 }
  0xe8   :  { %v1056_v60 = vadd.f32 %v1055_v56, %v1054_v52 }
  0xea   :  { %v465_v0 = vadd.f32 %v1056_v60, %v395_v59 }
 0x104   :  { %v1089_v53 = vpop.f32.mrf.mxu0 }
 0x106   :  { %v1090_v57 = vpop.f32.mrf.mxu0 }
 0x107   :  { %v1124_v58 = vpop.f32.mrf.mxu1  ;;  %v1091_v62 = vadd.f32 %v1090_v57, %v1089_v53 }
 0x109   :  { %v1125_v63 = vpop.f32.mrf.mxu1  ;;  %v535_v3 = vadd.f32 %v1091_v62, %v465_v0 }
 0x10a   :  { %v1126_v4 = vadd.f32 %v1125_v63, %v1124_v58 }
 0x10c   :  { %v605_v8 = vadd.f32 %v1126_v4, %v535_v3 }
 0x126   :  { %v1159_v61 = vpop.f32.mrf.mxu0 }
 0x128   :  { %v1160_v1 = vpop.f32.mrf.mxu0 }
 0x129   :  { %v1161_v6 = vadd.f32 %v1160_v1, %v1159_v61 }
 0x12a   :  { %v1194_v2 = vpop.f32.mrf.mxu1 }
 0x12b   :  { %v675_v11 = vadd.f32 %v1161_v6, %v605_v8 }
 0x12c   :  { %v1195_v7 = vpop.f32.mrf.mxu1 }
 0x12d   :  { %v1196_v12 = vadd.f32 %v1195_v7, %v1194_v2 }
 0x12f   :  { %v745_v15 = vadd.f32 %v1196_v12, %v675_v11 }
 0x149   :  { %v1229_v5 = vpop.f32.mrf.mxu0 }
 0x14b   :  { %v1230_v9 = vpop.f32.mrf.mxu0 }
 0x14c   :  { %v1264_v10 = vpop.f32.mrf.mxu1  ;;  %v1231_v13 = vadd.f32 %v1230_v9, %v1229_v5 }
 0x14e   :  { %v1265_v14 = vpop.f32.mrf.mxu1  ;;  %v815_v16 = vadd.f32 %v1231_v13, %v745_v15 }
 0x14f   :  { %v1266_v17 = vadd.f32 %v1265_v14, %v1264_v10 }
 0x151   :  { %v885_v20 = vadd.f32 %v1266_v17, %v815_v16 }
 0x16a   :  { %v1299_v18 = vpop.f32.mrf.mxu0 }
 0x16c   :  { %v1300_v19 = vpop.f32.mrf.mxu0 }
 0x16d   :  { %v1301_v21 = vadd.f32 %v1300_v19, %v1299_v18 }
 0x16f   :  { %v955_v22 = vadd.f32 %v1301_v21, %v885_v20 }
 0x171   :  { %v959_v23 = vsel %vm958_vm0, %v955_v22, -inf }
 0x172   :  { %960 = vmax.xlane.f32.xlu0 %v959_v23 }
 0x1fb   :  { %v961_v24 = vpop.xlane.xlu0 %960 }
 0x1fc   :  { %v962_v25 = vsub.f32 %v955_v22, %v961_v24 }
 0x1fe   :  { %v963_v26 = vmul.f32 1.442695, %v962_v25 }
 0x200   :  { %1303 = vpow2.f32 %v963_v26 }
 0x20d   :  { %v1304_v27 = vpop.eup %1303 }
 0x20e   :  { %v965_v28 = vsel %vm958_vm0, %v1304_v27, 0.0 }
 0x20f   :  { %966 = vadd.xlane.f32.xlu0 %v965_v28 }
 0x298   :  { %v967_v29 = vpop.xlane.xlu0 %966 }
 0x299   :  { %1305 = vlog2.f32 %v967_v29 }
 0x2a6   :  { %v1306_v30 = vpop.eup %1305 }
 0x2a7   :  { %v969_v31 = vmul.f32 0.6931472, %v1306_v30 }
 0x2a9   :  { %v970_v32 = vsub.f32 %v962_v25, %v969_v31 }
 0x2ab   :  { %971 = vst.msk [vmem:[#allocation2] sm:$0xff] %vm958_vm0, %v970_v32 }
 0x2ac   :  { %1318 = shalt.err (!%p1315_p4)
}
 0x2ad   :  { %981 = dma.vmem_to_hbm [thread:$0]  %s979_s1, 128, %s2280_s3, [#allocation3]  }
 0x2ae   :  { %1327 = dma.done.wait [#allocation3], 128  }
 0x2af   :  { %1328 = vsyncadd [#allocation3], 4294967168 }
 0x2b0   :  { %985 = vsyncpa [#allocation3], 1 }

</bundles_post_ra>
